<compile_context>
chip_gen: v6e
topology: v6e:2x2x1
jax: 0.10.0
libtpu: 0.0.40
codegen_flags: <defaults>
</compile_context>

<pallas_src>
import functools

import jax
import jax.numpy as jnp
from jax.experimental import pallas as pl
from jax.experimental.pallas import tpu as pltpu


def _vmem_capacity_bytes():
    """Physical VMEM per core; conservative 64 MiB (v7x) fallback."""
    try:
        return int(pltpu.get_tpu_info().vmem_capacity_bytes)
    except Exception:
        return 64 * 1024 * 1024


def _pick_ff_tile(d_model, d_ff, w_bytes, vmem_budget):
    """d_ff chunk: full d_ff when cheap, else a 128-multiple divisor sized so
    the double-buffered W1+W2 chunks use <= ~1/3 of the VMEM budget."""
    weight_budget = vmem_budget // 3
    tf_cap = weight_budget // (4 * d_model * w_bytes)   # W1 + W2, 2x buffered
    tf_cap = max(128, min(1024, int(tf_cap)))
    if d_ff <= tf_cap:
        return d_ff
    best = 0
    for t in range(128, tf_cap + 1, 128):
        if d_ff % t == 0:
            best = t
    if best:
        return best
    # Pathological d_ff (no 128-multiple divisor <= cap): single chunk.
    return d_ff


def _pick_row_tile(rows, d_model, tf, x_bytes, out_bytes, acc_bytes, w_bytes,
                   vmem_budget, align):
    """Largest MXU-aligned row tile that fits the VMEM budget.  Weights are
    re-streamed once per row tile, so spend VMEM on tm (raises arithmetic
    intensity), not on tf."""
    fixed = 4 * d_model * tf * w_bytes + 2 * (tf + d_model) * 4  # weights+biases
    per_row = d_model * (2 * x_bytes + 2 * out_bytes + acc_bytes)
    tm_cap = max(align, (vmem_budget - fixed) // per_row)
    tm_cap = int(min(tm_cap, 1024))
    rows_al = ((rows + align - 1) // align) * align
    if rows_al <= tm_cap:
        return rows_al                           # whole problem in one row tile
    for mult in (256, 128, align):               # MXU-friendly granularity
        tm = (tm_cap // mult) * mult
        if tm >= mult:
            return tm
    return align


def _ffn_kernel(x_ref, w1_ref, b1_ref, w2_ref, b2_ref, o_ref, *scratch):
    """One (row-tile, d_ff-chunk) step of y = relu(x @ W1 + b1) @ W2 + b2.

    With no scratch, the f32 output block itself is the accumulator (its block
    index is invariant along the d_ff grid axis)."""
    acc_ref = scratch[0] if scratch else o_ref
    k = pl.program_id(1)

    # First matmul + bias + ReLU for this d_ff chunk (f32 MXU accumulation).
    h = jnp.dot(x_ref[...].astype(w1_ref.dtype), w1_ref[...],
                preferred_element_type=jnp.float32)
    h = jnp.maximum(h + b1_ref[...].astype(jnp.float32), 0.0)
    # TODO(synk): dropout is identity in eval mode; training-mode dropout would
    # use pltpu.prng_seed / pltpu.prng_random_bits on `h` here.

    # Second matmul: this chunk's contribution to the output rows.
    contrib = jnp.dot(h.astype(w2_ref.dtype), w2_ref[...],
                      preferred_element_type=jnp.float32)

    @pl.when(k == 0)
    def _first():
        acc_ref[...] = contrib            # direct write: no zero-fill + add

    @pl.when(k > 0)
    def _accumulate():
        acc_ref[...] += contrib

    @pl.when(k == pl.num_programs(1) - 1)
    def _finalize():
        o_ref[...] = (acc_ref[...] + b2_ref[...].astype(jnp.float32)
                      ).astype(o_ref.dtype)


def prepare_ffn_params(w1, b1, w2, b2, *, compute_dtype=jnp.bfloat16,
                       block_ff=None):
    """One-time weight preparation — call once and reuse (not in the hot path).

    Casts W1/W2 to `compute_dtype` and relayouts W1 chunk-major as
    (d_ff//tf, d_model, tf) so each per-chunk weight DMA is contiguous.
    Biases stay f32 (epilogue precision; negligible traffic)."""
    d_model, d_ff = w1.shape
    w_bytes = jnp.dtype(compute_dtype).itemsize
    vmem_budget = int(0.8 * _vmem_capacity_bytes())
    tf = (_pick_ff_tile(d_model, d_ff, w_bytes, vmem_budget)
          if block_ff is None else block_ff)
    assert d_ff % tf == 0, "block_ff must divide d_ff"
    assert tf == d_ff or tf % 128 == 0, \
        "block_ff must be a multiple of 128 (or equal d_ff)"
    w1c = jnp.transpose(
        jnp.asarray(w1, compute_dtype).reshape(d_model, d_ff // tf, tf),
        (1, 0, 2))
    w2c = jnp.asarray(w2, compute_dtype)
    b1c = jnp.asarray(b1, jnp.float32).reshape(1, d_ff)
    b2c = jnp.asarray(b2, jnp.float32).reshape(1, d_model)
    return w1c, b1c, w2c, b2c


@functools.partial(jax.jit, static_argnames=("block_rows",))
def feed_forward_network(x, w1c, b1, w2, b2, *, block_rows=None):
    """x: (..., d_model); (w1c, b1, w2, b2) from prepare_ffn_params."""
    *lead, d_model = x.shape
    n_chunks, dm_w, tf = w1c.shape
    assert dm_w == d_model, "prepared W1 does not match x's d_model"
    d_ff = n_chunks * tf

    rows = 1
    for d in lead:
        rows *= d
    x2d = x.reshape(rows, d_model)

    out_dtype = x.dtype
    x_bytes = jnp.dtype(x.dtype).itemsize
    w_bytes = jnp.dtype(w1c.dtype).itemsize
    out_bytes = jnp.dtype(out_dtype).itemsize

    # Accumulate directly into the f32 output block when possible (saves the
    # (tm, d_model) f32 scratch and the finalize copy); otherwise f32 scratch.
    use_scratch = out_dtype != jnp.float32
    acc_bytes = 4 if use_scratch else 0

    vmem_cap = _vmem_capacity_bytes()
    vmem_budget = int(0.8 * vmem_cap)
    align = 16 if (x_bytes < 4 or w_bytes < 4 or out_bytes < 4) else 8
    if block_rows is None:
        tm = _pick_row_tile(rows, d_model, tf, x_bytes, out_bytes, acc_bytes,
                            w_bytes, vmem_budget, align)
    else:
        tm = block_rows
        assert tm % align == 0, f"block_rows must be a multiple of {align}"

    # Pad rows to the row tile (tail rows are garbage and sliced off after).
    rows_pad = pl.cdiv(rows, tm) * tm
    if rows_pad != rows:
        x2d = jnp.pad(x2d, ((0, rows_pad - rows), (0, 0)))

    grid = (rows_pad // tm, n_chunks)

    # VMEM for this tiling: double-buffered tiles (+ optional acc scratch).
    tile_bytes = (2 * tm * d_model * x_bytes          # x row tile
                  + 4 * d_model * tf * w_bytes        # W1 + W2 chunks (2x buf)
                  + 2 * (tf + d_model) * 4            # biases (f32)
                  + 2 * tm * d_model * out_bytes      # output tile
                  + tm * d_model * acc_bytes)         # f32 scratch (if any)
    vmem_limit = min(max(int(1.25 * tile_bytes) + (4 << 20), 32 << 20),
                     vmem_cap)

    # Honest traffic estimate: weights/biases re-read once per row tile.
    n_row_tiles = rows_pad // tm
    flops = 4 * rows_pad * d_model * d_ff
    bytes_accessed = (rows_pad * d_model * (x_bytes + out_bytes)
                      + n_row_tiles * (2 * d_model * d_ff * w_bytes
                                       + (d_ff + d_model) * 4))

    scratch_shapes = ([pltpu.VMEM((tm, d_model), jnp.float32)]
                      if use_scratch else [])

    out2d = pl.pallas_call(
        _ffn_kernel,
        out_shape=jax.ShapeDtypeStruct((rows_pad, d_model), out_dtype),
        grid_spec=pltpu.PrefetchScalarGridSpec(
            num_scalar_prefetch=0,
            grid=grid,
            in_specs=[
                pl.BlockSpec((tm, d_model), lambda i, k: (i, 0)),        # x rows
                # chunk-major W1: contiguous (d_model, tf) slab per chunk
                pl.BlockSpec((None, d_model, tf), lambda i, k: (k, 0, 0)),
                pl.BlockSpec((1, tf), lambda i, k: (0, k)),              # b1
                pl.BlockSpec((tf, d_model), lambda i, k: (k, 0)),        # W2
                pl.BlockSpec((1, d_model), lambda i, k: (0, 0)),         # b2
            ],
            out_specs=pl.BlockSpec((tm, d_model), lambda i, k: (i, 0)),
            scratch_shapes=scratch_shapes,
        ),
        compiler_params=pltpu.CompilerParams(
            dimension_semantics=("parallel", "arbitrary"),
            vmem_limit_bytes=vmem_limit),
        cost_estimate=pl.CostEstimate(flops=flops, transcendentals=0,
                                      bytes_accessed=bytes_accessed),
    )(x2d, w1c, b1, w2, b2)

    if rows_pad != rows:
        out2d = out2d[:rows]
    return out2d.reshape(*lead, d_model)


def init_ffn_params(key, d_model, d_ff, dtype=jnp.float32):
    """nn.Linear-style init (uniform +-1/sqrt(fan_in)); (in, out) layout."""
    k1, k2, k3, k4 = jax.random.split(key, 4)
    bound1 = 1.0 / (d_model ** 0.5)
    bound2 = 1.0 / (d_ff ** 0.5)
    w1 = jax.random.uniform(k1, (d_model, d_ff), dtype, -bound1, bound1)
    b1 = jax.random.uniform(k2, (d_ff,), dtype, -bound1, bound1)
    w2 = jax.random.uniform(k3, (d_ff, d_model), dtype, -bound2, bound2)
    b2 = jax.random.uniform(k4, (d_model,), dtype, -bound2, bound2)
    return w1, b1, w2, b2


if __name__ == "__main__":
    key = jax.random.PRNGKey(0)
    kx, kp = jax.random.split(key)

    batch, seq, d_model, d_ff = 2, 8, 32, 64
    x = jax.random.normal(kx, (batch, seq, d_model), dtype=jnp.float32)
    w1, b1, w2, b2 = init_ffn_params(kp, d_model, d_ff)

    # Pure-JAX eval-mode reference: linear_2(dropout(relu(linear_1(x)))).
    ref = jnp.maximum(x @ w1 + b1, 0.0) @ w2 + b2

    # f32 weight path (tight tolerance). prepare_* is called once and reused.
    params_f32 = prepare_ffn_params(w1, b1, w2, b2, compute_dtype=jnp.float32)
    out_f32 = jax.block_until_ready(feed_forward_network(x, *params_f32))
    assert out_f32.shape == (batch, seq, d_model)
    assert jnp.allclose(out_f32, ref, atol=1e-5, rtol=1e-5)

    # bf16 weight path (f32 MXU accumulation) — default fast path.
    params_bf16 = prepare_ffn_params(w1, b1, w2, b2, compute_dtype=jnp.bfloat16)
    out_bf16 = jax.block_until_ready(feed_forward_network(x, *params_bf16))
    assert out_bf16.shape == (batch, seq, d_model)
    assert jnp.allclose(out_bf16, ref, atol=5e-2, rtol=5e-2)

    # Ragged row count exercises the padded-tail path (rows % tile != 0).
    x_ragged = jax.random.normal(kx, (3, 5, d_model), dtype=jnp.float32)
    ref_ragged = jnp.maximum(x_ragged @ w1 + b1, 0.0) @ w2 + b2
    out_ragged = jax.block_until_ready(
        feed_forward_network(x_ragged, *params_f32))
    assert jnp.allclose(out_ragged, ref_ragged, atol=1e-5, rtol=1e-5)

    print("KERNEL_OK")
</pallas_src>

<mosaic_0001>
module attributes {stable_mosaic.version = 11 : i64} {
  func.func @_ffn_kernel(%arg0: i32, %arg1: i32, %arg2: memref<16x32xf32, #tpu.memory_space<vmem>>, %arg3: memref<1x32x64xf32, #tpu.memory_space<vmem>>, %arg4: memref<1x64xf32, #tpu.memory_space<vmem>>, %arg5: memref<64x32xf32, #tpu.memory_space<vmem>>, %arg6: memref<1x32xf32, #tpu.memory_space<vmem>>, %arg7: memref<16x32xf32, #tpu.memory_space<vmem>>) attributes {dimension_semantics = [#tpu.dimension_semantics<parallel>, #tpu.dimension_semantics<arbitrary>], iteration_bounds = array<i64: 1, 1>, scalar_prefetch = 0 : i64, scratch_operands = 0 : i64, tpu.core_type = #tpu.core_type<tc>, window_params = [{transform_indices = @transform_0, window_bounds = array<i64: 16, 32>}, {transform_indices = @transform_1, window_bounds = array<i64: 1, 32, 64>}, {transform_indices = @transform_2, window_bounds = array<i64: 1, 64>}, {transform_indices = @transform_3, window_bounds = array<i64: 64, 32>}, {pipeline_mode = #tpu.pipeline_mode<synchronous>, transform_indices = @transform_4, window_bounds = array<i64: 1, 32>}, {transform_indices = @transform_5, window_bounds = array<i64: 16, 32>}]} {
    %c0 = arith.constant 0 : index
    %c0_0 = arith.constant 0 : index
    %0 = vector.load %arg2[%c0, %c0_0] : memref<16x32xf32, #tpu.memory_space<vmem>>, vector<16x32xf32>
    %c0_1 = arith.constant 0 : index
    %c0_2 = arith.constant 0 : index
    %c0_3 = arith.constant 0 : index
    %1 = vector.load %arg3[%c0_1, %c0_2, %c0_3] : memref<1x32x64xf32, #tpu.memory_space<vmem>>, vector<1x32x64xf32>
    %2 = vector.shape_cast %1 : vector<1x32x64xf32> to vector<32x64xf32>
    %cst = arith.constant dense<0.000000e+00> : vector<16x64xf32>
    %3 = tpu.matmul %0, %2, %cst {dimension_numbers = #tpu.dot_dimension_numbers<[1], [0], [0], [1], [0, 0, 1, 1], [], []>} : vector<16x32xf32>, vector<32x64xf32>, vector<16x64xf32> -> vector<16x64xf32>
    %c0_4 = arith.constant 0 : index
    %c0_5 = arith.constant 0 : index
    %4 = vector.load %arg4[%c0_4, %c0_5] : memref<1x64xf32, #tpu.memory_space<vmem>>, vector<1x64xf32>
    %5 = vector.broadcast %4 : vector<1x64xf32> to vector<16x64xf32>
    %6 = arith.addf %3, %5 : vector<16x64xf32>
    %cst_6 = arith.constant 0.000000e+00 : f32
    %7 = vector.broadcast %cst_6 : f32 to vector<16x64xf32>
    %8 = arith.maximumf %6, %7 : vector<16x64xf32>
    %c0_7 = arith.constant 0 : index
    %c0_8 = arith.constant 0 : index
    %9 = vector.load %arg5[%c0_7, %c0_8] : memref<64x32xf32, #tpu.memory_space<vmem>>, vector<64x32xf32>
    %cst_9 = arith.constant dense<0.000000e+00> : vector<16x32xf32>
    %10 = tpu.matmul %8, %9, %cst_9 {dimension_numbers = #tpu.dot_dimension_numbers<[1], [0], [0], [1], [0, 0, 1, 1], [], []>} : vector<16x64xf32>, vector<64x32xf32>, vector<16x32xf32> -> vector<16x32xf32>
    %c0_i32 = arith.constant 0 : i32
    %11 = arith.cmpi eq, %arg1, %c0_i32 : i32
    %12 = arith.extui %11 : i1 to i32
    %c0_i32_10 = arith.constant 0 : i32
    %13 = arith.cmpi ne, %12, %c0_i32_10 : i32
    scf.if %13 {
      %c0_15 = arith.constant 0 : index
      %c0_16 = arith.constant 0 : index
      %20 = vector.load %arg7[%c0_15, %c0_16] : memref<16x32xf32, #tpu.memory_space<vmem>>, vector<16x32xf32>
      tpu.vector_store %arg7[%c0_15, %c0_16], %10 {strides = array<i32>} : memref<16x32xf32, #tpu.memory_space<vmem>>, vector<16x32xf32>,
    } else {
    }
    %c0_i32_11 = arith.constant 0 : i32
    %14 = arith.cmpi sgt, %arg1, %c0_i32_11 : i32
    %15 = arith.extui %14 : i1 to i32
    %c0_i32_12 = arith.constant 0 : i32
    %16 = arith.cmpi ne, %15, %c0_i32_12 : i32
    scf.if %16 {
      %c0_15 = arith.constant 0 : index
      %c0_16 = arith.constant 0 : index
      %20 = vector.load %arg7[%c0_15, %c0_16] : memref<16x32xf32, #tpu.memory_space<vmem>>, vector<16x32xf32>
      %21 = arith.addf %20, %10 : vector<16x32xf32>
      %c0_17 = arith.constant 0 : index
      %c0_18 = arith.constant 0 : index
      %22 = vector.load %arg7[%c0_17, %c0_18] : memref<16x32xf32, #tpu.memory_space<vmem>>, vector<16x32xf32>
      tpu.vector_store %arg7[%c0_17, %c0_18], %21 {strides = array<i32>} : memref<16x32xf32, #tpu.memory_space<vmem>>, vector<16x32xf32>,
    } else {
    }
    %c0_i32_13 = arith.constant 0 : i32
    %17 = arith.cmpi eq, %arg1, %c0_i32_13 : i32
    %18 = arith.extui %17 : i1 to i32
    %c0_i32_14 = arith.constant 0 : i32
    %19 = arith.cmpi ne, %18, %c0_i32_14 : i32
    scf.if %19 {
      %c0_15 = arith.constant 0 : index
      %c0_16 = arith.constant 0 : index
      %20 = vector.load %arg7[%c0_15, %c0_16] : memref<16x32xf32, #tpu.memory_space<vmem>>, vector<16x32xf32>
      %c0_17 = arith.constant 0 : index
      %c0_18 = arith.constant 0 : index
      %21 = vector.load %arg6[%c0_17, %c0_18] : memref<1x32xf32, #tpu.memory_space<vmem>>, vector<1x32xf32>
      %22 = vector.broadcast %21 : vector<1x32xf32> to vector<16x32xf32>
      %23 = arith.addf %20, %22 : vector<16x32xf32>
      %c0_19 = arith.constant 0 : index
      %c0_20 = arith.constant 0 : index
      %24 = vector.load %arg7[%c0_19, %c0_20] : memref<16x32xf32, #tpu.memory_space<vmem>>, vector<16x32xf32>
      tpu.vector_store %arg7[%c0_19, %c0_20], %23 {strides = array<i32>} : memref<16x32xf32, #tpu.memory_space<vmem>>, vector<16x32xf32>,
    } else {
    }
    return
  }
  func.func @transform_0(%arg0: i32, %arg1: i32) -> (i32, i32) {
    %c0_i32 = arith.constant 0 : i32
    %c0_i32_0 = arith.constant 0 : i32
    return %arg0, %c0_i32 : i32, i32
  }
  func.func @transform_1(%arg0: i32, %arg1: i32) -> (i32, i32, i32) {
    %c0_i32 = arith.constant 0 : i32
    %c0_i32_0 = arith.constant 0 : i32
    %c0_i32_1 = arith.constant 0 : i32
    return %arg1, %c0_i32, %c0_i32_0 : i32, i32, i32
  }
  func.func @transform_2(%arg0: i32, %arg1: i32) -> (i32, i32) {
    %c0_i32 = arith.constant 0 : i32
    %c0_i32_0 = arith.constant 0 : i32
    return %c0_i32, %arg1 : i32, i32
  }
  func.func @transform_3(%arg0: i32, %arg1: i32) -> (i32, i32) {
    %c0_i32 = arith.constant 0 : i32
    %c0_i32_0 = arith.constant 0 : i32
    return %arg1, %c0_i32 : i32, i32
  }
  func.func @transform_4(%arg0: i32, %arg1: i32) -> (i32, i32) {
    %c0_i32 = arith.constant 0 : i32
    %c0_i32_0 = arith.constant 0 : i32
    %c0_i32_1 = arith.constant 0 : i32
    return %c0_i32, %c0_i32_0 : i32, i32
  }
  func.func @transform_5(%arg0: i32, %arg1: i32) -> (i32, i32) {
    %c0_i32 = arith.constant 0 : i32
    %c0_i32_0 = arith.constant 0 : i32
    return %arg0, %c0_i32 : i32, i32
  }
}

</mosaic_0001>

<bundles_post_ra>
// kernel: feed_forward_network.1
= control target key start
LH: loop header
LB: loop body
LE: loop exit
PB: predicated region body
PF: predicated region fallthrough
CT: control target
= control target key end

     0   :  { %vm34_vm0 = vcmask 261120   ;;  %s423_s0 = inlined_call_operand.vmem [shape: f32[16,32], index: 0, kind: input, shape index: {}]   ;;  %s424_s1 = inlined_call_operand.vmem [shape: f32[1,32,64], index: 1, kind: input, shape index: {}]   ;;  %s425_s2 = inlined_call_operand.vmem [shape: f32[1,64], index: 2, kind: input, shape index: {}]   ;;  %s426_s3 = inlined_call_operand.vmem [shape: f32[64,32], index: 3, kind: input, shape index: {}]   ;;  %s427_s4 = inlined_call_operand.vmem [shape: f32[1,32], index: 4, kind: input, shape index: {}]   ;;  %s428_s5 = inlined_call_operand.hbm [shape: f32[16,32], index: 5, kind: output, shape index: {}]  }
   0x1   :  { %v26_v0 = vld [vmem:[%s424_s1 + $0x18] sm:$0xff]  ;;  %v25_v1 = vld [vmem:[%s424_s1 + $0x10] sm:$0xff]  ;;  %v21_v2 = vld [vmem:[%s423_s0] sm:$0xff] }
   0x2   :  { %278 = vmatprep.subr.mxu0 %v26_v0  ;;  %v24_v3 = vld [vmem:[%s424_s1 + $0x8] sm:$0xff]  ;;  %286 = vmatprep.mubr.msk.f32.mxu0 %vm34_vm0, %v21_v2  ;;  %v125_v4 = vld [vmem:[%s426_s3 + $0x38] sm:$0xff]  ;;  %v124_v5 = vld [vmem:[%s426_s3 + $0x30] sm:$0xff] }
   0x3   :  { %279 = vmatpush3.msra.mxu0 %v26_v0  ;;  %289 = vmatprep.subr.mxu1 %v125_v4 }
   0x4   :  { %280 = vmatprep.subr.mxu0 %v25_v1 }
   0x5   :  { %10 = vsyncpa [#allocation3], 0  ;;  %281 = vmatpush3.msra.mxu0 %v25_v1  ;;  %v23_v6 = vld [vmem:[%s424_s1] sm:$0xff]  ;;  %290 = vmatpush3.msra.mxu1 %v125_v4  ;;  %v123_v7 = vld [vmem:[%s426_s3 + $0x28] sm:$0xff]  ;;  %vm126_vm1 = vcmask 523264  }
   0x6   :  { %282 = vmatprep.subr.mxu0 %v24_v3  ;;  %291 = vmatprep.subr.mxu1 %v124_v5  ;;  %v22_v8 = vld [vmem:[%s423_s0 + $0x8] sm:$0xff]  ;;  %v122_v9 = vld [vmem:[%s426_s3 + $0x20] sm:$0xff]  ;;  %v121_v10 = vld [vmem:[%s426_s3 + $0x18] sm:$0xff] }
   0x7   :  { %283 = vmatpush3.msra.mxu0 %v24_v3  ;;  %292 = vmatpush3.msra.mxu1 %v124_v5  ;;  %v120_v11 = vld [vmem:[%s426_s3 + $0x10] sm:$0xff]  ;;  %v119_v12 = vld [vmem:[%s426_s3 + $0x8] sm:$0xff]  ;;  %v118_v13 = vld [vmem:[%s426_s3] sm:$0xff] }
   0x8   :  { %284 = vmatprep.subr.mxu0 %v23_v6  ;;  %293 = vmatprep.subr.mxu1 %v123_v7  ;;  %v256_v14 = vld [vmem:[%s425_s2] ss:$0 sm:$0xff]  ;;  %s333_s2 = smov [#allocation2]  }
   0x9   :  { %285 = vmatpush3.msra.mxu0 %v23_v6  ;;  %294 = vmatpush3.msra.mxu1 %v123_v7  ;;  %v261_v23 = vld [vmem:[%s427_s4] ss:$0 sm:$0xff]  ;;  %s245_s22 = sshll.u32 %s333_s2, 4  ;;  %s246_s22 = int_to_ptr.vmem [resolvable:$true] %s245_s22 }
   0xa   :  { %287 = vmatmul.mubr.msk.f32.vlgmr.msra.gmra.mxu0 %vm34_vm0, %v22_v8  ;;  %295 = vmatprep.subr.mxu1 %v122_v9  ;;  %s311_s23 = scalar_lea.vmem %s246_s22, 256  ;;  %p316_p1 = scmp.lt.s32.totalorder %s246_s22, %s246_s22 }
   0xb   :  { %296 = vmatpush3.msra.mxu1 %v122_v9  ;;  %p312_p0 = scmp.ne.s32.totalorder %s246_s22, %s311_s23  ;;  %p317_p2 = scmp.lt.s32.totalorder %s311_s23, %s311_s23 }
   0xc   :  { %297 = vmatprep.subr.mxu1 %v121_v10 }
   0xd   :  { %298 = vmatpush3.msra.mxu1 %v121_v10  ;;  %p318_p3 = por %p317_p2, %p316_p1 }
   0xe   :  { %299 = vmatprep.subr.mxu1 %v120_v11 }
   0xf   :  { %300 = vmatpush3.msra.mxu1 %v120_v11  ;;  %p319_p4 = pnand %p318_p3, %p312_p0 }
  0x10   :  { %301 = vmatprep.subr.mxu1 %v119_v12 }
  0x11   :  { %302 = vmatpush3.msra.mxu1 %v119_v12 }
  0x12   :  { %303 = vmatprep.subr.mxu1 %v118_v13 }
  0x13   :  { %304 = vmatpush3.msra.mxu1 %v118_v13 }
  0xca   :  { %v288_v15 = vpop.f32.mrf.mxu0 }
  0xcb   :  { %v113_v16 = vadd.f32 %v288_v15, %v256_v14 }
  0xcc   :  { %v107_v17 = vpop.f32.mrf.mxu0 }
  0xcd   :  { %v108_v18 = vadd.f32 %v256_v14, %v107_v17  ;;  %v117_v20 = vmax.f32 %v113_v16, 0.0 }
  0xcf   :  { %v116_v19 = vmax.f32 %v108_v18, 0.0 }
  0xd1   :  { %305 = vmatprep.mubr.msk.f32.mxu1 %vm126_vm1, %v116_v19 }
  0xd2   :  { %306 = vmatmul.mubr.msk.f32.vlgmr.msra.gmra.mxu1 %vm126_vm1, %v117_v20 }
 0x192   :  { %v307_v21 = vpop.f32.mrf.mxu1 }
 0x193   :  { %213 = vst.msk [vmem:[#allocation2 + $0x8] sm:$0xff] %vm34_vm0, %v307_v21 }
 0x194   :  { %v199_v22 = vpop.f32.mrf.mxu1 }
 0x195   :  { %212 = vst.msk [vmem:[#allocation2] sm:$0xff] %vm34_vm0, %v199_v22 }
 0x19a   :  { %v228_v24 = vld [vmem:[#allocation2 + $0x8] sm:$0xff] }
 0x19b   :  { %v237_v25 = vadd.f32 %v261_v23, %v228_v24 }
 0x19c   :  { %v227_v26 = vld [vmem:[#allocation2] sm:$0xff] }
 0x19d   :  { %239 = vst.msk [vmem:[#allocation2 + $0x8] sm:$0xff] %vm34_vm0, %v237_v25  ;;  %v236_v27 = vadd.f32 %v261_v23, %v227_v26 }
 0x19f   :  { %238 = vst.msk [vmem:[#allocation2] sm:$0xff] %vm34_vm0, %v236_v27 }
 0x1a0   :  { %322 = shalt.err (!%p319_p4)
}
 0x1a1   :  { %s334_s24 = smov 128   ;;  %s335_s4 = smov 8  }
 0x1a2   :  { %251 = dma.vmem_to_hbm [thread:$0]  %s246_s22, 256, %s428_s5, [#allocation3], %s334_s24, %s334_s24, %s335_s4  }
 0x1a3   :  { %331 = dma.done.wait [#allocation3], 256  }
 0x1a4   :  { %332 = vsyncadd [#allocation3], 4294967040 }
 0x1a5   :  { %255 = vsyncpa [#allocation3], 1 }

</bundles_post_ra>
